<compile_context>
chip_gen: v7x
topology: tpu7x:2x2x1
jax: 0.10.0
libtpu: 0.0.40
codegen_flags: <defaults>
</compile_context>

<pallas_src>
import functools

import jax
import jax.numpy as jnp
from jax import lax
from jax.experimental import pallas as pl
from jax.experimental.pallas import tpu as pltpu

_EPS = 1e-5  # nn.BatchNorm2d default eps


def _round_up(x, m):
    return (x + m - 1) // m * m


# ---------------------------------------------------------------------------
# Fused kernel: [all layers: folded 1x1 conv+BN(train)+ReLU] + max over points
# ---------------------------------------------------------------------------
def _make_fused_kernel(num_layers, batch, n_pad, n_valid, matmul_dtype,
                       act_dtype, has_mask):
    """Kernel body for fixed (num_layers, B, N_pad, N_valid)."""
    inv_m = 1.0 / float(batch * n_valid)  # true element count (pads excluded)

    def kernel(*refs):
        # refs = (x, [mask], w_0, gamma_0, beta_0, ..., out)
        x_ref = refs[0]
        mask = refs[1][...] if has_mask else None          # [1, B*N_pad] f32
        layer_refs = refs[(2 if has_mask else 1):-1]
        out_ref = refs[-1]

        h = x_ref[...]                                      # [Cin0p, B*N_pad]

        for l in range(num_layers):
            w = layer_refs[3 * l][...]                      # [Cout, Cin] f32
            gamma = layer_refs[3 * l + 1][...]              # [Cout, 1] f32
            beta = layer_refs[3 * l + 2][...]               # [Cout, 1] f32

            h_mm = h.astype(matmul_dtype)

            # --- BN batch stats from INPUT-side moments (MXU), f32 scalars ---
            # Pad columns of h are exactly zero, so they drop out of both
            # moments; we divide by the true count B*N.
            sum_h = jnp.sum(h.astype(jnp.float32), axis=-1, keepdims=True)
            gram = lax.dot_general(h_mm, h_mm, (((1,), (1,)), ((), ())),
                                   preferred_element_type=jnp.float32)
            mean_h = sum_h * inv_m                          # [Cin, 1]
            mean_y = jnp.dot(w, mean_h,
                             preferred_element_type=jnp.float32)   # [Cout, 1]
            wg = jnp.dot(w, gram,
                         preferred_element_type=jnp.float32)       # [Cout, Cin]
            ey2 = jnp.sum(wg * w, axis=-1, keepdims=True) * inv_m  # [Cout, 1]
            # Clamp guards E[y^2]-mean^2 cancellation going slightly negative.
            var = jnp.maximum(ey2 - mean_y * mean_y, 0.0)
            scale = gamma * lax.rsqrt(var + _EPS)
            shift = beta - mean_y * scale
            # Conv bias omitted: cancels exactly under training-mode BN.

            # --- folded conv+BN: one MXU matmul, then add/ReLU (+mask) ---
            w_fold = (scale * w).astype(matmul_dtype)       # [Cout, Cin]
            y = jnp.dot(w_fold, h_mm,
                        preferred_element_type=jnp.float32)        # [Cout, M]
            z = y + shift
            if mask is not None:
                z = z * mask       # keep pad columns exactly zero for next layer
            h = jnp.maximum(z, 0.0)
            if act_dtype != jnp.float32:
                h = h.astype(act_dtype)

        # torch.max(new_points, 2)[0]: per-batch max over its N points.
        # Each batch segment is a 128-aligned static lane slice (pads are 0 and
        # ReLU output >= 0, so they never win the max).
        cols = [jnp.max(h[:, b * n_pad:(b + 1) * n_pad], axis=-1, keepdims=True)
                for b in range(batch)]
        pooled = jnp.concatenate(cols, axis=-1).astype(jnp.float32)  # [C_last, B]
        out_ref[...] = jnp.transpose(pooled, (1, 0))                 # [B, C_last]

    return kernel


# ---------------------------------------------------------------------------
# Module forward (all heavy work in the single Pallas call)
# ---------------------------------------------------------------------------
def pointnet_set_abstraction_forward(xyz, points, params, *,
                                     matmul_dtype=jnp.float32,
                                     act_dtype=jnp.float32):
    """
    xyz:    [B, 3, N] float32
    points: [B, D, N] float32 or None
    params: list of (conv_weight [Cout, Cin],
                     conv_bias   [Cout]   (unused: cancels under training BN),
                     bn_gamma    [Cout, 1],
                     bn_beta     [Cout, 1])
    matmul_dtype / act_dtype:
        f32/f32  -> PyTorch numerics (recommended on v5e).
        bf16/bf16 -> half the activation VMEM + native bf16 MXU on v6e/v7x;
                     BN statistics / scale / shift stay f32.
    Returns (new_xyz [B, 3, 1], new_points [B, C_last, 1]).
    """
    B, c_xyz, N = xyz.shape
    feats = [xyz] if points is None else [xyz, points]
    x = jnp.concatenate(feats, axis=1).astype(jnp.float32)      # [B, C0, N]
    c0 = x.shape[1]

    num_layers = len(params)
    c_last = params[-1][0].shape[0]

    # ---- wrapper-side layout fold + padding (HBM copy XLA can overlap) ----
    c0p = _round_up(c0, 8)        # sublane-pad first conv K dim (e.g. 6 -> 8)
    n_pad = _round_up(N, 128)     # lane-pad each per-batch point segment
    xt = jnp.transpose(x, (1, 0, 2))                            # [C0, B, N]
    xt = jnp.pad(xt, ((0, c0p - c0), (0, 0), (0, n_pad - N)))
    h0 = xt.reshape(c0p, B * n_pad).astype(act_dtype)           # [C0p, B*Npad]

    has_mask = n_pad != N
    operands = [h0]
    if has_mask:
        lane_mask = (jnp.arange(n_pad) < N).astype(jnp.float32)
        operands.append(jnp.tile(lane_mask, B)[None, :])        # [1, B*Npad]

    for li, (w, _bias, gamma, beta) in enumerate(params):
        w = w.astype(jnp.float32)
        if li == 0 and c0p != c0:
            w = jnp.pad(w, ((0, 0), (0, c0p - c0)))             # zero K-pad
        operands += [w,
                     gamma.reshape(-1, 1).astype(jnp.float32),
                     beta.reshape(-1, 1).astype(jnp.float32)]

    # ---- VMEM budget derived from the chip (not a fixed 48 MiB clamp) ----
    try:
        vmem_cap = pltpu.get_tpu_info().vmem_capacity_bytes
    except Exception:
        vmem_cap = 64 << 20       # conservative fallback (v7x per-TC physical)
    chans = [c0p] + [p[0].shape[0] for p in params]
    cmax = max(chans)
    m_pad = B * n_pad
    act_b = jnp.dtype(act_dtype).itemsize
    mm_b = jnp.dtype(matmul_dtype).itemsize
    live = m_pad * (act_b * chans[0]                       # resident folded input
                    + 2 * act_b * cmax                     # h, h_next
                    + 4 * cmax                             # f32 y/z temp
                    + (mm_b * cmax if matmul_dtype != act_dtype else 0)
                    + (4 if has_mask else 0))
    param_b = sum(4 * (p[0].size + 2 * p[0].shape[0]) for p in params)
    est = live + param_b
    vmem_limit = int(min(max(2 * est, 32 << 20), int(0.85 * vmem_cap)))
    # TODO(synk): if 2*est exceeds ~0.85*VMEM (v7x hits this first), fall back
    # to the tiled two-pass variant with a 'parallel' point-tile grid axis.

    # ---- advisory cost estimate for the surrounding XLA schedule ----
    flops = 0
    for i in range(num_layers):
        cin, cout = chans[i], chans[i + 1]
        flops += 2 * m_pad * cin * (cout + cin)            # folded conv + Gram
        flops += 2 * cout * cin * (cin + 1)                # W@G, W@mean_h
    bytes_accessed = (h0.size * act_b + param_b + 4 * B * c_last
                      + (4 * m_pad if has_mask else 0))
    cost = pl.CostEstimate(flops=int(flops),
                           transcendentals=int(sum(chans[1:])),
                           bytes_accessed=int(bytes_accessed))

    vmem = pl.BlockSpec(memory_space=pltpu.MemorySpace.VMEM)
    kernel = _make_fused_kernel(num_layers, B, n_pad, N, matmul_dtype,
                                act_dtype, has_mask)
    pooled = pl.pallas_call(
        kernel,
        out_shape=jax.ShapeDtypeStruct((B, c_last), jnp.float32),
        in_specs=[vmem] * len(operands),
        out_specs=vmem,
        compiler_params=pltpu.CompilerParams(vmem_limit_bytes=vmem_limit),
        cost_estimate=cost,
    )(*operands)

    new_xyz = jnp.zeros((B, c_xyz, 1), xyz.dtype)               # zeros, permuted
    new_points = pooled[:, :, None]                             # [B, C_last, 1]
    return new_xyz, new_points


# ---------------------------------------------------------------------------
# Deterministic parameter init (shapes mirror the nn.Module)
# ---------------------------------------------------------------------------
def make_params(in_channel, mlp, key):
    params = []
    last = in_channel
    for out_channel in mlp:
        key, kw, kb, kg, kbt = jax.random.split(key, 5)
        w = (0.1 * jax.random.normal(kw, (out_channel, last))).astype(jnp.float32)
        bias = (0.1 * jax.random.normal(kb, (out_channel,))).astype(jnp.float32)
        gamma = (1.0 + 0.1 * jax.random.normal(kg, (out_channel, 1))).astype(jnp.float32)
        beta = (0.1 * jax.random.normal(kbt, (out_channel, 1))).astype(jnp.float32)
        params.append((w, bias, gamma, beta))
        last = out_channel
    return params


# ---------------------------------------------------------------------------
# Pure-JAX reference (mirrors the PyTorch module, incl. the conv bias)
# ---------------------------------------------------------------------------
def _reference_forward(xyz, points, params):
    B, C, N = xyz.shape
    xyz_t = jnp.transpose(xyz, (0, 2, 1))
    if points is not None:
        pts_t = jnp.transpose(points, (0, 2, 1))
        new_points = jnp.concatenate([xyz_t, pts_t], axis=-1)   # [B, N, 3+D]
    else:
        new_points = xyz_t
    feat = jnp.transpose(new_points, (0, 2, 1))[..., None]      # [B, Cin, N, 1]
    for (w, bias, gamma, beta) in params:
        y = jnp.einsum("oc,bcnh->bonh", w, feat,
                       precision=lax.Precision.HIGHEST)
        y = y + bias[None, :, None, None]
        mean = jnp.mean(y, axis=(0, 2, 3), keepdims=True)
        var = jnp.mean((y - mean) ** 2, axis=(0, 2, 3), keepdims=True)
        y = (y - mean) / jnp.sqrt(var + _EPS)
        y = y * gamma.reshape(1, -1, 1, 1) + beta.reshape(1, -1, 1, 1)
        feat = jnp.maximum(y, 0.0)
    pooled = jnp.max(feat, axis=2)                              # [B, C_last, 1]
    new_xyz = jnp.zeros((B, C, 1), xyz.dtype)
    return new_xyz, pooled


if __name__ == "__main__":
    B, D = 2, 3
    in_channel = 3 + D
    mlp = (32, 64)
    # Only the group_all=True branch exists in the reference module.
    # TODO(synk): group_all=False branch asserts 'Not Implemented' upstream.

    k_xyz, k_pts, k_par = jax.random.split(jax.random.PRNGKey(0), 3)
    params = make_params(in_channel, mlp, k_par)

    cases = [
        # (N, matmul_dtype, act_dtype, tolerance) — padded and lane-aligned paths
        (16, jnp.float32, jnp.float32, 2e-2),
        (128, jnp.float32, jnp.float32, 2e-2),
        (128, jnp.bfloat16, jnp.bfloat16, 2e-1),
    ]
    for (N, mm_dt, act_dt, tol) in cases:
        kx = jax.random.fold_in(k_xyz, N)
        kp = jax.random.fold_in(k_pts, N)
        xyz = jax.random.normal(kx, (B, 3, N), dtype=jnp.float32)
        points = jax.random.normal(kp, (B, D, N), dtype=jnp.float32)

        fwd = jax.jit(functools.partial(pointnet_set_abstraction_forward,
                                        matmul_dtype=mm_dt, act_dtype=act_dt))
        new_xyz, new_points = fwd(xyz, points, params)
        jax.block_until_ready((new_xyz, new_points))

        ref_xyz, ref_points = _reference_forward(xyz, points, params)

        assert new_xyz.shape == (B, 3, 1)
        assert new_points.shape == (B, mlp[-1], 1)
        assert bool(jnp.all(jnp.isfinite(new_points)))
        max_err = float(jnp.max(jnp.abs(new_points.astype(jnp.float32)
                                        - ref_points)))
        assert max_err <= tol, (N, str(mm_dt), max_err)

    print("KERNEL_OK")
</pallas_src>

<mosaic_0001>
module attributes {stable_mosaic.version = 11 : i64} {
  func.func @kernel(%arg0: memref<8x256xf32, #tpu.memory_space<vmem>>, %arg1: memref<1x256xf32, #tpu.memory_space<vmem>>, %arg2: memref<32x8xf32, #tpu.memory_space<vmem>>, %arg3: memref<32x1xf32, #tpu.memory_space<vmem>>, %arg4: memref<32x1xf32, #tpu.memory_space<vmem>>, %arg5: memref<64x32xf32, #tpu.memory_space<vmem>>, %arg6: memref<64x1xf32, #tpu.memory_space<vmem>>, %arg7: memref<64x1xf32, #tpu.memory_space<vmem>>, %arg8: memref<2x64xf32, #tpu.memory_space<vmem>>) attributes {dimension_semantics = [], scalar_prefetch = 0 : i64, scratch_operands = 0 : i64, tpu.core_type = #tpu.core_type<tc>} {
    %c0 = arith.constant 0 : index
    %c0_0 = arith.constant 0 : index
    %0 = vector.load %arg1[%c0, %c0_0] : memref<1x256xf32, #tpu.memory_space<vmem>>, vector<1x256xf32>
    %c0_1 = arith.constant 0 : index
    %c0_2 = arith.constant 0 : index
    %1 = vector.load %arg0[%c0_1, %c0_2] : memref<8x256xf32, #tpu.memory_space<vmem>>, vector<8x256xf32>
    %c0_3 = arith.constant 0 : index
    %c0_4 = arith.constant 0 : index
    %2 = vector.load %arg2[%c0_3, %c0_4] : memref<32x8xf32, #tpu.memory_space<vmem>>, vector<32x8xf32>
    %c0_5 = arith.constant 0 : index
    %c0_6 = arith.constant 0 : index
    %3 = vector.load %arg3[%c0_5, %c0_6] : memref<32x1xf32, #tpu.memory_space<vmem>>, vector<32x1xf32>
    %c0_7 = arith.constant 0 : index
    %c0_8 = arith.constant 0 : index
    %4 = vector.load %arg4[%c0_7, %c0_8] : memref<32x1xf32, #tpu.memory_space<vmem>>, vector<32x1xf32>
    %cst = arith.constant dense<0.000000e+00> : vector<8xf32>
    %5 = vector.multi_reduction <add>, %1, %cst [1] : vector<8x256xf32> to vector<8xf32>
    %6 = vector.shape_cast %5 : vector<8xf32> to vector<8x1xf32>
    %cst_9 = arith.constant dense<0.000000e+00> : vector<8x8xf32>
    %7 = tpu.matmul %1, %1, %cst_9 {dimension_numbers = #tpu.dot_dimension_numbers<[1], [1], [0], [0], [0, 0, 1, 0], [], []>} : vector<8x256xf32>, vector<8x256xf32>, vector<8x8xf32> -> vector<8x8xf32>
    %cst_10 = arith.constant 3.125000e-02 : f32
    %8 = vector.broadcast %cst_10 : f32 to vector<8x1xf32>
    %9 = arith.mulf %6, %8 : vector<8x1xf32>
    %cst_11 = arith.constant dense<0.000000e+00> : vector<32x1xf32>
    %10 = tpu.matmul %2, %9, %cst_11 {dimension_numbers = #tpu.dot_dimension_numbers<[1], [0], [0], [1], [0, 0, 1, 1], [], []>} : vector<32x8xf32>, vector<8x1xf32>, vector<32x1xf32> -> vector<32x1xf32>
    %cst_12 = arith.constant dense<0.000000e+00> : vector<32x8xf32>
    %11 = tpu.matmul %2, %7, %cst_12 {dimension_numbers = #tpu.dot_dimension_numbers<[1], [0], [0], [1], [0, 0, 1, 1], [], []>} : vector<32x8xf32>, vector<8x8xf32>, vector<32x8xf32> -> vector<32x8xf32>
    %12 = arith.mulf %11, %2 : vector<32x8xf32>
    %cst_13 = arith.constant dense<0.000000e+00> : vector<32xf32>
    %13 = vector.multi_reduction <add>, %12, %cst_13 [1] : vector<32x8xf32> to vector<32xf32>
    %14 = vector.shape_cast %13 : vector<32xf32> to vector<32x1xf32>
    %cst_14 = arith.constant 3.125000e-02 : f32
    %15 = vector.broadcast %cst_14 : f32 to vector<32x1xf32>
    %16 = arith.mulf %14, %15 : vector<32x1xf32>
    %17 = arith.mulf %10, %10 : vector<32x1xf32>
    %18 = arith.subf %16, %17 : vector<32x1xf32>
    %cst_15 = arith.constant 0.000000e+00 : f32
    %19 = vector.broadcast %cst_15 : f32 to vector<32x1xf32>
    %20 = arith.maximumf %18, %19 : vector<32x1xf32>
    %cst_16 = arith.constant 9.99999974E-6 : f32
    %21 = vector.broadcast %cst_16 : f32 to vector<32x1xf32>
    %22 = arith.addf %20, %21 : vector<32x1xf32>
    %23 = math.rsqrt %22 : vector<32x1xf32>
    %24 = arith.mulf %3, %23 : vector<32x1xf32>
    %25 = arith.mulf %10, %24 : vector<32x1xf32>
    %26 = arith.subf %4, %25 : vector<32x1xf32>
    %27 = vector.broadcast %24 : vector<32x1xf32> to vector<32x8xf32>
    %28 = arith.mulf %27, %2 : vector<32x8xf32>
    %cst_17 = arith.constant dense<0.000000e+00> : vector<32x256xf32>
    %29 = tpu.matmul %28, %1, %cst_17 {dimension_numbers = #tpu.dot_dimension_numbers<[1], [0], [0], [1], [0, 0, 1, 1], [], []>} : vector<32x8xf32>, vector<8x256xf32>, vector<32x256xf32> -> vector<32x256xf32>
    %30 = vector.broadcast %26 : vector<32x1xf32> to vector<32x256xf32>
    %31 = arith.addf %29, %30 : vector<32x256xf32>
    %32 = vector.broadcast %0 : vector<1x256xf32> to vector<32x256xf32>
    %33 = arith.mulf %31, %32 : vector<32x256xf32>
    %cst_18 = arith.constant 0.000000e+00 : f32
    %34 = vector.broadcast %cst_18 : f32 to vector<32x256xf32>
    %35 = arith.maximumf %33, %34 : vector<32x256xf32>
    %c0_19 = arith.constant 0 : index
    %c0_20 = arith.constant 0 : index
    %36 = vector.load %arg5[%c0_19, %c0_20] : memref<64x32xf32, #tpu.memory_space<vmem>>, vector<64x32xf32>
    %c0_21 = arith.constant 0 : index
    %c0_22 = arith.constant 0 : index
    %37 = vector.load %arg6[%c0_21, %c0_22] : memref<64x1xf32, #tpu.memory_space<vmem>>, vector<64x1xf32>
    %c0_23 = arith.constant 0 : index
    %c0_24 = arith.constant 0 : index
    %38 = vector.load %arg7[%c0_23, %c0_24] : memref<64x1xf32, #tpu.memory_space<vmem>>, vector<64x1xf32>
    %cst_25 = arith.constant dense<0.000000e+00> : vector<32xf32>
    %39 = vector.multi_reduction <add>, %35, %cst_25 [1] : vector<32x256xf32> to vector<32xf32>
    %40 = vector.shape_cast %39 : vector<32xf32> to vector<32x1xf32>
    %cst_26 = arith.constant dense<0.000000e+00> : vector<32x32xf32>
    %41 = tpu.matmul %35, %35, %cst_26 {dimension_numbers = #tpu.dot_dimension_numbers<[1], [1], [0], [0], [0, 0, 1, 0], [], []>} : vector<32x256xf32>, vector<32x256xf32>, vector<32x32xf32> -> vector<32x32xf32>
    %cst_27 = arith.constant 3.125000e-02 : f32
    %42 = vector.broadcast %cst_27 : f32 to vector<32x1xf32>
    %43 = arith.mulf %40, %42 : vector<32x1xf32>
    %cst_28 = arith.constant dense<0.000000e+00> : vector<64x1xf32>
    %44 = tpu.matmul %36, %43, %cst_28 {dimension_numbers = #tpu.dot_dimension_numbers<[1], [0], [0], [1], [0, 0, 1, 1], [], []>} : vector<64x32xf32>, vector<32x1xf32>, vector<64x1xf32> -> vector<64x1xf32>
    %cst_29 = arith.constant dense<0.000000e+00> : vector<64x32xf32>
    %45 = tpu.matmul %36, %41, %cst_29 {dimension_numbers = #tpu.dot_dimension_numbers<[1], [0], [0], [1], [0, 0, 1, 1], [], []>} : vector<64x32xf32>, vector<32x32xf32>, vector<64x32xf32> -> vector<64x32xf32>
    %46 = arith.mulf %45, %36 : vector<64x32xf32>
    %cst_30 = arith.constant dense<0.000000e+00> : vector<64xf32>
    %47 = vector.multi_reduction <add>, %46, %cst_30 [1] : vector<64x32xf32> to vector<64xf32>
    %48 = vector.shape_cast %47 : vector<64xf32> to vector<64x1xf32>
    %cst_31 = arith.constant 3.125000e-02 : f32
    %49 = vector.broadcast %cst_31 : f32 to vector<64x1xf32>
    %50 = arith.mulf %48, %49 : vector<64x1xf32>
    %51 = arith.mulf %44, %44 : vector<64x1xf32>
    %52 = arith.subf %50, %51 : vector<64x1xf32>
    %cst_32 = arith.constant 0.000000e+00 : f32
    %53 = vector.broadcast %cst_32 : f32 to vector<64x1xf32>
    %54 = arith.maximumf %52, %53 : vector<64x1xf32>
    %cst_33 = arith.constant 9.99999974E-6 : f32
    %55 = vector.broadcast %cst_33 : f32 to vector<64x1xf32>
    %56 = arith.addf %54, %55 : vector<64x1xf32>
    %57 = math.rsqrt %56 : vector<64x1xf32>
    %58 = arith.mulf %37, %57 : vector<64x1xf32>
    %59 = arith.mulf %44, %58 : vector<64x1xf32>
    %60 = arith.subf %38, %59 : vector<64x1xf32>
    %61 = vector.broadcast %58 : vector<64x1xf32> to vector<64x32xf32>
    %62 = arith.mulf %61, %36 : vector<64x32xf32>
    %cst_34 = arith.constant dense<0.000000e+00> : vector<64x256xf32>
    %63 = tpu.matmul %62, %35, %cst_34 {dimension_numbers = #tpu.dot_dimension_numbers<[1], [0], [0], [1], [0, 0, 1, 1], [], []>} : vector<64x32xf32>, vector<32x256xf32>, vector<64x256xf32> -> vector<64x256xf32>
    %64 = vector.broadcast %60 : vector<64x1xf32> to vector<64x256xf32>
    %65 = arith.addf %63, %64 : vector<64x256xf32>
    %66 = vector.broadcast %0 : vector<1x256xf32> to vector<64x256xf32>
    %67 = arith.mulf %65, %66 : vector<64x256xf32>
    %cst_35 = arith.constant 0.000000e+00 : f32
    %68 = vector.broadcast %cst_35 : f32 to vector<64x256xf32>
    %69 = arith.maximumf %67, %68 : vector<64x256xf32>
    %70 = vector.extract_strided_slice %69 {offsets = [0, 0], sizes = [64, 128], strides = [1, 1]} : vector<64x256xf32> to vector<64x128xf32>
    %cst_36 = arith.constant dense<0xFF800000> : vector<64xf32>
    %71 = vector.multi_reduction <maximumf>, %70, %cst_36 [1] : vector<64x128xf32> to vector<64xf32>
    %72 = vector.shape_cast %71 : vector<64xf32> to vector<64x1xf32>
    %73 = vector.extract_strided_slice %69 {offsets = [0, 128], sizes = [64, 128], strides = [1, 1]} : vector<64x256xf32> to vector<64x128xf32>
    %cst_37 = arith.constant dense<0xFF800000> : vector<64xf32>
    %74 = vector.multi_reduction <maximumf>, %73, %cst_37 [1] : vector<64x128xf32> to vector<64xf32>
    %75 = vector.shape_cast %74 : vector<64xf32> to vector<64x1xf32>
    %76 = tpu.concatenate %72, %75 in 1 : vector<64x1xf32>, vector<64x1xf32> -> vector<64x2xf32>
    %77 = tpu.transpose %76, [1, 0] : vector<64x2xf32> -> vector<2x64xf32>
    %c0_38 = arith.constant 0 : index
    %c0_39 = arith.constant 0 : index
    %78 = vector.load %arg8[%c0_38, %c0_39] : memref<2x64xf32, #tpu.memory_space<vmem>>, vector<2x64xf32>
    tpu.vector_store %arg8[%c0_38, %c0_39], %77 {strides = array<i32>} : memref<2x64xf32, #tpu.memory_space<vmem>>, vector<2x64xf32>,
    return
  }
}

</mosaic_0001>

<bundles_post_ra>
// kernel: tile.8
= control target key start
LH: loop header
LB: loop body
LE: loop exit
PB: predicated region body
PF: predicated region fallthrough
CT: control target
= control target key end

     0   :  { %s22_s0 = inlined_call_operand.vmem [shape: f32[128], index: 0, kind: input, shape index: {}]   ;;  %s23_s1 = inlined_call_operand.vmem [shape: f32[2,128], index: 1, kind: output, shape index: {}]  }
   0x1   :  { %v4_v0 = vld [vmem:[%s22_s0] ss:$0 sm:$0xff] }
   0x2   :  { %5 = vst [vmem:[%s23_s1] sm:$0x3] %v4_v0 }

// kernel: pointnet_set_abstraction_forward.1
= control target key start
LH: loop header
LB: loop body
LE: loop exit
PB: predicated region body
PF: predicated region fallthrough
CT: control target
= control target key end

     0   :  { %s1932_s0 = inlined_call_operand.vmem [shape: f32[8,256], index: 0, kind: input, shape index: {}]   ;;  %s1933_s1 = inlined_call_operand.vmem [shape: f32[1,256], index: 1, kind: input, shape index: {}]   ;;  %s1934_s2 = inlined_call_operand.vmem [shape: f32[32,8], index: 2, kind: input, shape index: {}]   ;;  %s1935_s3 = inlined_call_operand.vmem [shape: f32[32,1], index: 3, kind: input, shape index: {}]   ;;  %s1936_s4 = inlined_call_operand.vmem [shape: f32[32,1], index: 4, kind: input, shape index: {}]   ;;  %s1937_s5 = inlined_call_operand.vmem [shape: f32[64,32], index: 5, kind: input, shape index: {}]   ;;  %s1938_s6 = inlined_call_operand.vmem [shape: f32[64,1], index: 6, kind: input, shape index: {}]   ;;  %s1939_s7 = inlined_call_operand.vmem [shape: f32[64,1], index: 7, kind: input, shape index: {}]   ;;  %s1940_s8 = inlined_call_operand.hbm [shape: f32[2,64], index: 8, kind: output, shape index: {}]  }
   0x1   :  { %v32_v0 = vld [vmem:[%s1932_s0 + $0x8] sm:$0xff]  ;;  %v31_v1 = vld [vmem:[%s1932_s0] sm:$0xff] }
   0x2   :  { %13 = vsyncpa [#allocation3], 0  ;;  %48 = vmatprep.subr.mxu0 %v32_v0  ;;  %112 = vmatprep.mubr.f32.mxu0 %v32_v0  ;;  %v45_v2 = vadd.f32 %v32_v0, %v31_v1  ;;  %v1604_v3 = vld [vmem:[%s1934_s2] sm:$0xff]  ;;  %vm119_vm0 = vcmask 64512   ;;  %v1613_v5 = vld [vmem:[%s1934_s2 + $0x8] sm:$0xff]  ;;  %v1547_v27 = vmov 0  }
   0x3   :  { %49 = vmatpush1.xpose.msra.mxu0 %v31_v1  ;;  %1408 = vmatprep.mubr.msk.f32.mxu1 %vm119_vm0, %v1604_v3  ;;  %v1618_v7 = vld [vmem:[%s1934_s2 + $0x10] sm:$0xff]  ;;  %v1627_v8 = vld [vmem:[%s1934_s2 + $0x18] sm:$0xff]  ;;  %v38_v52 = vld [vmem:[%s1935_s3 + $0x8] sm:$0xff]  ;;  %v1548_v60 = vmov 0.0   ;;  %vm651_vm1 = vcmask 261120   ;;  %vm1279_vm2 = vcmask 7168  }
   0x4   :  { %46 = vadd.xlane.f32.xlu0 %v45_v2  ;;  %1497 = vset.pattern.permute.xlu1 %v1547_v27  ;;  %v37_v53 = vld [vmem:[%s1935_s3] sm:$0xff]  ;;  %v39_v58 = vld [vmem:[%s1935_s3 + $0x10] sm:$0xff]  ;;  %v40_v63 = vld [vmem:[%s1935_s3 + $0x18] sm:$0xff]  ;;  %vm1320_vm3 = vcmask 517120  }
   0x5   :  { %1498 = vset.pattern.permute.xlu0 %v1547_v27  ;;  %v42_v2 = vld [vmem:[%s1936_s4 + $0x8] sm:$0xff] }
   0x6   :  { %113 = vmatmul.mubr.f32.vlgmr.msra.gmra.mrb[0].mxu0 %v31_v1 }
   0x7   :  { %1416 = vmatprep.mubr.msk.f32.mxu0 %vm119_vm0, %v1604_v3 }
  0x91   :  { %v47_v9 = vpop.xlane.xlu0 %46 }
  0x92   :  { %v118_v10 = vmul.f32 0.03125, %v47_v9  ;;  %v41_v9 = vld [vmem:[%s1936_s4] sm:$0xff] }
  0x94   :  { %1406 = vmatprep.subr.mxu1 %v118_v10 }
  0x95   :  { %1407 = vmatpush3.msra.mxu1 %v118_v10 }
  0x96   :  { %1409 = vmatmul.mubr.msk.f32.vlgmr.msra.gmra.mrb[0].mxu1 %vm119_vm0, %v1613_v5 }
  0x97   :  { %1411 = vmatprep.mubr.msk.f32.mxu1 %vm119_vm0, %v1618_v7 }
  0x9a   :  { %1412 = vmatmul.mubr.msk.f32.gmra.mrb[2].mxu1 %vm119_vm0, %v1627_v8 }
  0xd9   :  { %v114_v4 = vpop.f32.mrb[0].mxu0 }
  0xda   :  { %v116_v6 = vpop.f32.mrb[1].mxu0  ;;  %1414 = vmatprep.subr.mxu0 %v114_v4 }
  0xdb   :  { %1415 = vmatpush3.msra.mxu0 %v114_v4 }
  0xdc   :  { %1417 = vmatmul.mubr.msk.f32.vlgmr.msra.gmra.mrb[2].mxu0 %vm119_vm0, %v1613_v5  ;;  %410 = vmatprep.subr.mxu0 %v32_v0 }
  0xdd   :  { %1419 = vmatprep.mubr.msk.f32.mxu0 %vm119_vm0, %v1618_v7  ;;  %411 = vmatpush1.msra.mxu0 %v31_v1 }
  0xe0   :  { %1420 = vmatmul.mubr.msk.f32.gmra.mrb[4].mxu0 %vm119_vm0, %v1627_v8 }
  0xe1   :  { %474 = vmatprep.mubr.f32.mxu0 %v1548_v60 }
 0x169   :  { %v1410_v23 = vpop.f32.mrb[0].mxu1 }
 0x16a   :  { %v198_v24 = vpop.f32.mrb[1].mxu1  ;;  %v323_v28 = vmul.f32 %v1410_v23, %v1410_v23 }
 0x16b   :  { %v322_v30 = vmul.f32 %v198_v24, %v198_v24 }
 0x16d   :  { %v1413_v25 = vpop.f32.mrb[2].mxu1 }
 0x16e   :  { %v208_v26 = vpop.f32.mrb[3].mxu1  ;;  %v325_v36 = vmul.f32 %v1413_v25, %v1413_v25 }
 0x16f   :  { %v324_v37 = vmul.f32 %v208_v26, %v208_v26 }
 0x1af   :  { %v1418_v11 = vpop.f32.mrb[2].mxu0 }
 0x1b0   :  { %v303_v12 = vmul.f32 %v1418_v11, %v1613_v5  ;;  %v283_v13 = vpop.f32.mrb[3].mxu0 }
 0x1b1   :  { %v302_v14 = vmul.f32 %v283_v13, %v1604_v3 }
 0x1b2   :  { %v309_v15 = vsel %vm119_vm0, %v303_v12, 0.0  ;;  %v43_v12 = vld [vmem:[%s1936_s4 + $0x10] sm:$0xff] }
 0x1b3   :  { %310 = vadd.xlane.f32.xlu1 %v309_v15  ;;  %v1421_v16 = vpop.f32.mrb[4].mxu0  ;;  %v306_v17 = vsel %vm119_vm0, %v302_v14, 0.0  ;;  %v44_v15 = vld [vmem:[%s1936_s4 + $0x18] sm:$0xff] }
 0x1b4   :  { %v305_v18 = vmul.f32 %v1421_v16, %v1627_v8  ;;  %v293_v19 = vpop.f32.mrb[5].mxu0  ;;  %307 = vadd.xlane.f32.xlu0 %v306_v17 }
 0x1b5   :  { %v304_v20 = vmul.f32 %v293_v19, %v1618_v7 }
 0x1b6   :  { %v315_v21 = vsel %vm119_vm0, %v305_v18, 0.0 }
 0x1b7   :  { %v312_v22 = vsel %vm119_vm0, %v304_v20, 0.0 }
 0x1b8   :  { %313 = vadd.xlane.f32.xlu1 %v312_v22  ;;  %316 = vadd.xlane.f32.xlu0 %v315_v21 }
 0x240   :  { %v311_v29 = vpop.xlane.xlu1 %310 }
 0x241   :  { %v319_v31 = vmul.f32 0.03125, %v311_v29  ;;  %v308_v32 = vpop.xlane.xlu0 %307 }
 0x242   :  { %v318_v33 = vmul.f32 0.03125, %v308_v32 }
 0x243   :  { %v327_v34 = vsub.f32 %v319_v31, %v323_v28 }
 0x244   :  { %v326_v35 = vsub.f32 %v318_v33, %v322_v30 }
 0x245   :  { %v331_v38 = vmax.f32 %v327_v34, 0.0  ;;  %v314_v39 = vpop.xlane.xlu1 %313  ;;  %v317_v40 = vpop.xlane.xlu0 %316 }
 0x246   :  { %v330_v41 = vmax.f32 %v326_v35, 0.0  ;;  %v320_v42 = vmul.f32 0.03125, %v314_v39  ;;  %v321_v43 = vmul.f32 0.03125, %v317_v40 }
 0x247   :  { %v335_v44 = vadd.f32 1e-05, %v331_v38 }
 0x248   :  { %v334_v45 = vadd.f32 1e-05, %v330_v41  ;;  %v328_v46 = vsub.f32 %v320_v42, %v324_v37  ;;  %v329_v47 = vsub.f32 %v321_v43, %v325_v36 }
 0x249   :  { %1499 = vrsqrt.f32 %v335_v44 }
 0x24a   :  { %1501 = vrsqrt.f32 %v334_v45  ;;  %v332_v48 = vmax.f32 %v328_v46, 0.0  ;;  %v333_v49 = vmax.f32 %v329_v47, 0.0 }
 0x24c   :  { %v336_v50 = vadd.f32 1e-05, %v332_v48  ;;  %v337_v51 = vadd.f32 1e-05, %v333_v49 }
 0x24e   :  { %1503 = vrsqrt.f32 %v336_v50 }
 0x24f   :  { %1505 = vrsqrt.f32 %v337_v51 }
 0x253   :  { %v1500_v54 = vpop.eup %1499 }
 0x254   :  { %v1502_v55 = vpop.eup %1501  ;;  %v343_v56 = vmul.f32 %v1500_v54, %v38_v52 }
 0x255   :  { %v342_v57 = vmul.f32 %v1502_v55, %v37_v53 }
 0x256   :  { %361 = vperm.xlu0 %1498, %v343_v56   ;;  %v347_v1 = vmul.f32 %v1410_v23, %v343_v56 }
 0x257   :  { %356 = vperm.xlu1 %1497, %v342_v57   ;;  %v346_v6 = vmul.f32 %v342_v57, %v198_v24  ;;  %v500_v24 = vlaneseq }
 0x258   :  { %v1504_v59 = vpop.eup %1503  ;;  %v351_v4 = vsub.f32 %v42_v2, %v347_v1 }
 0x259   :  { %v344_v61 = vmul.f32 %v1504_v59, %v39_v58  ;;  %v1506_v62 = vpop.eup %1505  ;;  %v350_v11 = vsub.f32 %v41_v9, %v346_v6 }
 0x25a   :  { %v345_v0 = vmul.f32 %v1506_v62, %v40_v63 }
 0x25b   :  { %366 = vperm.xlu1 %1497, %v344_v61   ;;  %v348_v10 = vmul.f32 %v344_v61, %v208_v26 }
 0x25c   :  { %v349_v14 = vmul.f32 %v1413_v25, %v345_v0  ;;  %v501_v25 = vshrl.u32 %v500_v24, 7  ;;  %v1715_v24 = vld [vmem:[%s1937_s5 + $0x10] sm:$0xff] }
 0x25d   :  { %v352_v13 = vsub.f32 %v43_v12, %v348_v10 }
 0x25e   :  { %v353_v16 = vsub.f32 %v44_v15, %v349_v14  ;;  %v502_v27 = vsub.s32 0, %v501_v25  ;;  %v506_v28 = vsub.s32 1, %v501_v25  ;;  %v1722_v25 = vld [vmem:[%s1937_s5 + $0x18] sm:$0xff] }
 0x25f   :  { %371 = vperm.xlu1 %1497, %v345_v0  }
 0x263   :  { %385 = vperm.xlu1 %1497, %v351_v4  }
 0x267   :  { %380 = vperm.xlu1 %1497, %v350_v11  }
 0x26b   :  { %390 = vperm.xlu1 %1497, %v352_v13   ;;  %v1699_v13 = vld [vmem:[%s1937_s5] sm:$0xff] }
 0x26c   :  { %1430 = vmatprep.mubr.msk.f32.mxu1 %vm651_vm1, %v1699_v13 }
 0x26f   :  { %395 = vperm.xlu1 %1497, %v353_v16  }
 0x2d5   :  { %v362_v19 = vpop.permute.xlu0 %361 }
 0x2d6   :  { %v357_v17 = vpop.permute.xlu1 %356  ;;  %v375_v21 = vmul.f32 %v362_v19, %v1613_v5  ;;  %v30_v5 = vld [vmem:[%s1933_s1] sm:$0x3] }
 0x2d7   :  { %v374_v18 = vmul.f32 %v357_v17, %v1604_v3  ;;  %v1684_v29 = vrot.slane %v30_v5, %v502_v27  ;;  %v1686_v31 = vrot.slane %v30_v5, %v506_v28  ;;  %v1736_v27 = vld [vmem:[%s1937_s5 + $0x28] sm:$0xff]  ;;  %v1741_v5 = vld [vmem:[%s1937_s5 + $0x30] sm:$0xff]  ;;  %v1750_v28 = vld [vmem:[%s1937_s5 + $0x38] sm:$0xff] }
 0x2d9   :  { %1344 = vmatmul.mubr.msk.f32.vlgmr.msra.gmra.mrb[6].mxu0 %vm119_vm0, %v374_v18 }
 0x2da   :  { %v367_v20 = vpop.permute.xlu1 %366  ;;  %480 = vmatprep.mubr.f32.mxu0 %v1548_v60 }
 0x2db   :  { %v376_v22 = vmul.f32 %v367_v20, %v1618_v7 }
 0x2dd   :  { %1345 = vmatmul.mubr.msk.f32.gmra.mrb[8].mxu0 %vm119_vm0, %v375_v21 }
 0x2de   :  { %486 = vmatprep.mubr.f32.mxu0 %v1548_v60  ;;  %v372_v23 = vpop.permute.xlu1 %371 }
 0x2df   :  { %v377_v3 = vmul.f32 %v372_v23, %v1627_v8 }
 0x2e1   :  { %1346 = vmatmul.mubr.msk.f32.gmra.mrb[10].mxu0 %vm119_vm0, %v376_v22 }
 0x2e2   :  { %492 = vmatprep.mubr.f32.mxu0 %v1548_v60  ;;  %v386_v26 = vpop.permute.xlu1 %385 }
 0x2e5   :  { %1347 = vmatmul.mubr.msk.f32.gmra.mrb[12].mxu0 %vm119_vm0, %v377_v3  ;;  %v1708_v3 = vld [vmem:[%s1937_s5 + $0x8] sm:$0xff] }
 0x2e6   :  { %v381_v7 = vpop.permute.xlu1 %380 }
 0x2ea   :  { %v391_v40 = vpop.permute.xlu1 %390 }
 0x2ee   :  { %v396_v54 = vpop.permute.xlu1 %395 }
 0x3ac   :  { %v476_v30 = vpop.f32.mrb[6].mxu0 }
 0x3ad   :  { %v477_v32 = vadd.f32 %v476_v30, %v381_v7  ;;  %v478_v33 = vpop.f32.mrb[7].mxu0 }
 0x3ae   :  { %v479_v8 = vadd.f32 %v478_v33, %v381_v7 }
 0x3af   :  { %v510_v34 = vmul.f32 %v1684_v29, %v477_v32 }
 0x3b0   :  { %v511_v35 = vmul.f32 %v1686_v31, %v479_v8  ;;  %v482_v36 = vpop.f32.mrb[8].mxu0 }
 0x3b1   :  { %v518_v37 = vmax.f32 %v510_v34, 0.0  ;;  %v483_v38 = vadd.f32 %v482_v36, %v386_v26  ;;  %v484_v39 = vpop.f32.mrb[9].mxu0 }
 0x3b2   :  { %v519_v41 = vmax.f32 %v511_v35, 0.0  ;;  %v485_v42 = vadd.f32 %v484_v39, %v386_v26  ;;  %v1727_v26 = vld [vmem:[%s1937_s5 + $0x20] sm:$0xff] }
 0x3b3   :  { %v512_v43 = vmul.f32 %v1684_v29, %v483_v38 }
 0x3b4   :  { %v513_v44 = vmul.f32 %v1686_v31, %v485_v42  ;;  %v488_v45 = vpop.f32.mrb[10].mxu0  ;;  %626 = vmatprep.mubr.f32.mxu0 %v519_v41  ;;  %v550_v46 = vadd.f32 %v519_v41, %v518_v37 }
 0x3b5   :  { %v520_v47 = vmax.f32 %v512_v43, 0.0  ;;  %v489_v48 = vadd.f32 %v488_v45, %v391_v40  ;;  %v490_v49 = vpop.f32.mrb[11].mxu0 }
 0x3b6   :  { %v521_v50 = vmax.f32 %v513_v44, 0.0  ;;  %v491_v51 = vadd.f32 %v490_v49, %v391_v40  ;;  %551 = vadd.xlane.f32.xlu1 %v550_v46 }
 0x3b7   :  { %v514_v52 = vmul.f32 %v1684_v29, %v489_v48  ;;  %v1464_v53 = vpack.c.bf16 %v520_v47, %v518_v37 }
 0x3b8   :  { %v515_v55 = vmul.f32 %v1686_v31, %v491_v51  ;;  %v494_v56 = vpop.f32.mrb[12].mxu0  ;;  %v1462_v57 = vpack.c.bf16 %v521_v50, %v519_v41  ;;  %v553_v58 = vadd.f32 %v521_v50, %v520_v47 }
 0x3b9   :  { %v522_v59 = vmax.f32 %v514_v52, 0.0  ;;  %v495_v61 = vadd.f32 %v494_v56, %v396_v54  ;;  %v496_v62 = vpop.f32.mrb[13].mxu0 }
 0x3ba   :  { %v523_v63 = vmax.f32 %v515_v55, 0.0  ;;  %v497_v0 = vadd.f32 %v496_v62, %v396_v54  ;;  %1463 = vmatprep.subr.bf16.mxu0 %v1462_v57  ;;  %554 = vadd.xlane.f32.xlu0 %v553_v58 }
 0x3bb   :  { %v516_v1 = vmul.f32 %v1684_v29, %v495_v61  ;;  %1465 = vmatpush1.bf16.xpose.msra.mxu0 %v1464_v53 }
 0x3bc   :  { %v517_v2 = vmul.f32 %v1686_v31, %v497_v0  ;;  %v556_v4 = vadd.f32 %v523_v63, %v522_v59 }
 0x3bd   :  { %v524_v6 = vmax.f32 %v516_v1, 0.0 }
 0x3be   :  { %v525_v9 = vmax.f32 %v517_v2, 0.0  ;;  %557 = vadd.xlane.f32.xlu1 %v556_v4 }
 0x3bf   :  { %v1468_v10 = vpack.c.bf16 %v524_v6, %v522_v59 }
 0x3c0   :  { %v559_v11 = vadd.f32 %v525_v9, %v524_v6  ;;  %v1466_v12 = vpack.c.bf16 %v525_v9, %v523_v63 }
 0x3c2   :  { %560 = vadd.xlane.f32.xlu0 %v559_v11  ;;  %1467 = vmatprep.subr.bf16.mxu0 %v1466_v12 }
 0x3c3   :  { %1469 = vmatpush1.bf16.xpose.msra.mxu0 %v1468_v10 }
 0x3ca   :  { %627 = vmatmul.mubr.f32.vlgmr.msra.gmra.mrb[14].mxu0 %v518_v37 }
 0x3cb   :  { %631 = vmatprep.mubr.f32.mxu0 %v521_v50 }
 0x3ce   :  { %632 = vmatmul.mubr.f32.gmra.mrb[16].mxu0 %v520_v47 }
 0x3cf   :  { %636 = vmatprep.mubr.f32.mxu0 %v523_v63 }
 0x3d2   :  { %637 = vmatmul.mubr.f32.gmra.mrb[18].mxu0 %v522_v59 }
 0x3d3   :  { %641 = vmatprep.mubr.f32.mxu0 %v525_v9 }
 0x3d6   :  { %642 = vmatmul.mubr.f32.gmra.mrb[20].mxu0 %v524_v6 }
 0x3d7   :  { %1450 = vmatprep.mubr.msk.f32.mxu0 %vm651_vm1, %v1699_v13 }
 0x443   :  { %v552_v14 = vpop.xlane.xlu1 %551 }
 0x444   :  { %v647_v16 = vmul.f32 0.03125, %v552_v14 }
 0x447   :  { %v555_v15 = vpop.xlane.xlu0 %554 }
 0x448   :  { %v648_v17 = vmul.f32 0.03125, %v555_v15 }
 0x44a   :  { %v1470_v18 = vpack.c.bf16 %v648_v17, %v647_v16 }
 0x44b   :  { %v558_v19 = vpop.xlane.xlu1 %557 }
 0x44c   :  { %1471 = vmatprep.subr.bf16.mxu1 %v1470_v18  ;;  %v649_v21 = vmul.f32 0.03125, %v558_v19 }
 0x44d   :  { %1473 = vmatpush3.bf16.msra.mxu1 %v1470_v18 }
 0x44f   :  { %v561_v20 = vpop.xlane.xlu0 %560 }
 0x450   :  { %v650_v22 = vmul.f32 0.03125, %v561_v20 }
 0x452   :  { %v1474_v23 = vpack.c.bf16 %v650_v22, %v649_v21 }
 0x454   :  { %1475 = vmatprep.subr.bf16.mxu1 %v1474_v23 }
 0x455   :  { %1477 = vmatpush3.bf16.msra.mxu1 %v1474_v23 }
 0x456   :  { %1487 = vmatprep.subr.bf16.mxu1 %v1462_v57 }
 0x458   :  { %1431 = vmatmul.mubr.msk.f32.vlgmr.msra.gmra.mrb[4].mxu1 %vm651_vm1, %v1708_v3 }
 0x459   :  { %1489 = vmatpush1.bf16.msra.mxu1 %v1464_v53  ;;  %1433 = vmatprep.mubr.msk.f32.mxu1 %vm651_vm1, %v1715_v24 }
 0x45a   :  { %1491 = vmatprep.subr.bf16.mxu1 %v1466_v12 }
 0x45c   :  { %1434 = vmatmul.mubr.msk.f32.gmra.mrb[6].mxu1 %vm651_vm1, %v1722_v25 }
 0x45d   :  { %1493 = vmatpush1.bf16.msra.mxu1 %v1468_v10  ;;  %1436 = vmatprep.mubr.msk.f32.mxu1 %vm651_vm1, %v1727_v26 }
 0x460   :  { %1437 = vmatmul.mubr.msk.f32.gmra.mrb[8].mxu1 %vm651_vm1, %v1736_v27 }
 0x461   :  { %1439 = vmatprep.mubr.msk.f32.mxu1 %vm651_vm1, %v1741_v5 }
 0x464   :  { %1440 = vmatmul.mubr.msk.f32.gmra.mrb[10].mxu1 %vm651_vm1, %v1750_v28 }
 0x465   :  { %1166 = vmatprep.mubr.f32.mxu1 %v1548_v60 }
 0x49d   :  { %v628_v7 = vpop.f32.mrb[14].mxu0 }
 0x49e   :  { %v630_v30 = vpop.f32.mrb[15].mxu0 }
 0x4a1   :  { %v633_v32 = vpop.f32.mrb[16].mxu0 }
 0x4a2   :  { %v1478_v33 = vpack.c.bf16 %v633_v32, %v628_v7  ;;  %v635_v8 = vpop.f32.mrb[17].mxu0 }
 0x4a4   :  { %1479 = vmatprep.subr.bf16.mxu0 %v1478_v33 }
 0x4a5   :  { %v638_v34 = vpop.f32.mrb[18].mxu0  ;;  %1481 = vmatpush3.bf16.msra.mxu0 %v1478_v33 }
 0x4a6   :  { %v640_v35 = vpop.f32.mrb[19].mxu0 }
 0x4a9   :  { %v643_v36 = vpop.f32.mrb[20].mxu0 }
 0x4aa   :  { %v1482_v37 = vpack.c.bf16 %v643_v36, %v638_v34  ;;  %v645_v38 = vpop.f32.mrb[21].mxu0 }
 0x4ac   :  { %1483 = vmatprep.subr.bf16.mxu0 %v1482_v37 }
 0x4ad   :  { %1485 = vmatpush3.bf16.msra.mxu0 %v1482_v37 }
 0x4b0   :  { %1451 = vmatmul.mubr.msk.f32.vlgmr.msra.gmra.mrb[22].mxu0 %vm651_vm1, %v1708_v3 }
 0x4b1   :  { %1453 = vmatprep.mubr.msk.f32.mxu0 %vm651_vm1, %v1715_v24 }
 0x4b4   :  { %1454 = vmatmul.mubr.msk.f32.gmra.mrb[24].mxu0 %vm651_vm1, %v1722_v25 }
 0x4b5   :  { %1456 = vmatprep.mubr.msk.f32.mxu0 %vm651_vm1, %v1727_v26 }
 0x4b8   :  { %1457 = vmatmul.mubr.msk.f32.gmra.mrb[26].mxu0 %vm651_vm1, %v1736_v27 }
 0x4b9   :  { %1459 = vmatprep.mubr.msk.f32.mxu0 %vm651_vm1, %v1741_v5 }
 0x4bc   :  { %1460 = vmatmul.mubr.msk.f32.gmra.mrb[28].mxu0 %vm651_vm1, %v1750_v28 }
 0x52b   :  { %v1785_v0 = vpop.f32.mrb[4].mxu1 }
 0x52c   :  { %v1787_v1 = vpop.f32.mrb[5].mxu1  ;;  %v927_v12 = vmul.f32 %v1785_v0, %v1785_v0 }
 0x52d   :  { %v926_v15 = vmul.f32 %v1787_v1, %v1787_v1 }
 0x52f   :  { %v1789_v2 = vpop.f32.mrb[6].mxu1 }
 0x530   :  { %v1791_v4 = vpop.f32.mrb[7].mxu1  ;;  %v929_v20 = vmul.f32 %v1789_v2, %v1789_v2 }
 0x531   :  { %v928_v23 = vmul.f32 %v1791_v4, %v1791_v4 }
 0x533   :  { %v1793_v6 = vpop.f32.mrb[8].mxu1 }
 0x534   :  { %v1795_v9 = vpop.f32.mrb[9].mxu1  ;;  %v931_v36 = vmul.f32 %v1793_v6, %v1793_v6 }
 0x537   :  { %v1797_v10 = vpop.f32.mrb[10].mxu1 }
 0x538   :  { %v1799_v11 = vpop.f32.mrb[11].mxu1 }
 0x583   :  { %v1452_v39 = vpop.f32.mrb[22].mxu0 }
 0x584   :  { %v887_v40 = vmul.f32 %v1452_v39, %v1708_v3  ;;  %v847_v41 = vpop.f32.mrb[23].mxu0 }
 0x585   :  { %v886_v42 = vmul.f32 %v847_v41, %v1699_v13 }
 0x586   :  { %v897_v43 = vsel %vm651_vm1, %v887_v40, 0.0  ;;  %v930_v40 = vmul.f32 %v1795_v9, %v1795_v9 }
 0x587   :  { %898 = vadd.xlane.f32.xlu0 %v897_v43  ;;  %v1455_v44 = vpop.f32.mrb[24].mxu0  ;;  %v894_v45 = vsel %vm651_vm1, %v886_v42, 0.0 }
 0x588   :  { %v889_v46 = vmul.f32 %v1455_v44, %v1722_v25  ;;  %v857_v47 = vpop.f32.mrb[25].mxu0  ;;  %895 = vadd.xlane.f32.xlu1 %v894_v45 }
 0x589   :  { %v888_v48 = vmul.f32 %v857_v47, %v1715_v24  ;;  %v933_v47 = vmul.f32 %v1797_v10, %v1797_v10 }
 0x58a   :  { %v903_v49 = vsel %vm651_vm1, %v889_v46, 0.0 }
 0x58b   :  { %904 = vadd.xlane.f32.xlu0 %v903_v49  ;;  %v1458_v50 = vpop.f32.mrb[26].mxu0  ;;  %v900_v51 = vsel %vm651_vm1, %v888_v48, 0.0 }
 0x58c   :  { %v891_v52 = vmul.f32 %v1458_v50, %v1736_v27  ;;  %v867_v53 = vpop.f32.mrb[27].mxu0  ;;  %901 = vadd.xlane.f32.xlu1 %v900_v51 }
 0x58d   :  { %v890_v54 = vmul.f32 %v867_v53, %v1727_v26 }
 0x58e   :  { %v909_v55 = vsel %vm651_vm1, %v891_v52, 0.0  ;;  %v932_v52 = vmul.f32 %v1799_v11, %v1799_v11 }
 0x58f   :  { %910 = vadd.xlane.f32.xlu0 %v909_v55  ;;  %v1461_v56 = vpop.f32.mrb[28].mxu0  ;;  %v906_v57 = vsel %vm651_vm1, %v890_v54, 0.0 }
 0x590   :  { %v893_v58 = vmul.f32 %v1461_v56, %v1750_v28  ;;  %v877_v59 = vpop.f32.mrb[29].mxu0  ;;  %907 = vadd.xlane.f32.xlu1 %v906_v57 }
 0x591   :  { %v892_v61 = vmul.f32 %v877_v59, %v1741_v5 }
 0x592   :  { %v915_v62 = vsel %vm651_vm1, %v893_v58, 0.0 }
 0x593   :  { %916 = vadd.xlane.f32.xlu0 %v915_v62  ;;  %v912_v63 = vsel %vm651_vm1, %v892_v61, 0.0 }
 0x594   :  { %913 = vadd.xlane.f32.xlu1 %v912_v63  ;;  %v535_v63 = vld [vmem:[%s1938_s6 + $0x8] sm:$0xff] }
 0x614   :  { %v899_v14 = vpop.xlane.xlu0 %898 }
 0x615   :  { %v919_v16 = vmul.f32 0.03125, %v899_v14  ;;  %v896_v17 = vpop.xlane.xlu1 %895 }
 0x616   :  { %v918_v18 = vmul.f32 0.03125, %v896_v17 }
 0x617   :  { %v935_v19 = vsub.f32 %v919_v16, %v927_v12 }
 0x618   :  { %v934_v21 = vsub.f32 %v918_v18, %v926_v15  ;;  %v905_v22 = vpop.xlane.xlu0 %904  ;;  %v534_v15 = vld [vmem:[%s1938_s6] sm:$0xff] }
 0x619   :  { %v943_v7 = vmax.f32 %v935_v19, 0.0  ;;  %v921_v30 = vmul.f32 0.03125, %v905_v22  ;;  %v902_v32 = vpop.xlane.xlu1 %901  ;;  %v536_v22 = vld [vmem:[%s1938_s6 + $0x10] sm:$0xff] }
 0x61a   :  { %v942_v33 = vmax.f32 %v934_v21, 0.0  ;;  %v920_v8 = vmul.f32 0.03125, %v902_v32  ;;  %v537_v32 = vld [vmem:[%s1938_s6 + $0x18] sm:$0xff] }
 0x61b   :  { %v951_v34 = vadd.f32 1e-05, %v943_v7  ;;  %v937_v35 = vsub.f32 %v921_v30, %v929_v20 }
 0x61c   :  { %v950_v37 = vadd.f32 1e-05, %v942_v33  ;;  %v936_v38 = vsub.f32 %v920_v8, %v928_v23  ;;  %v911_v39 = vpop.xlane.xlu0 %910  ;;  %v538_v33 = vld [vmem:[%s1938_s6 + $0x20] sm:$0xff] }
 0x61d   :  { %1507 = vrsqrt.f32 %v951_v34  ;;  %v945_v41 = vmax.f32 %v937_v35, 0.0  ;;  %v923_v42 = vmul.f32 0.03125, %v911_v39  ;;  %v908_v43 = vpop.xlane.xlu1 %907 }
 0x61e   :  { %1509 = vrsqrt.f32 %v950_v37  ;;  %v944_v44 = vmax.f32 %v936_v38, 0.0  ;;  %v922_v45 = vmul.f32 0.03125, %v908_v43  ;;  %v539_v37 = vld [vmem:[%s1938_s6 + $0x28] sm:$0xff]  ;;  %v540_v38 = vld [vmem:[%s1938_s6 + $0x30] sm:$0xff] }
 0x61f   :  { %v939_v46 = vsub.f32 %v923_v42, %v931_v36  ;;  %v953_v48 = vadd.f32 1e-05, %v945_v41 }
 0x620   :  { %v952_v49 = vadd.f32 1e-05, %v944_v44  ;;  %v938_v50 = vsub.f32 %v922_v45, %v930_v40  ;;  %v917_v51 = vpop.xlane.xlu0 %916  ;;  %v541_v44 = vld [vmem:[%s1938_s6 + $0x38] sm:$0xff]  ;;  %v542_v45 = vld [vmem:[%s1939_s7] sm:$0xff] }
 0x621   :  { %v947_v53 = vmax.f32 %v939_v46, 0.0  ;;  %v925_v54 = vmul.f32 0.03125, %v917_v51  ;;  %v914_v55 = vpop.xlane.xlu1 %913 }
 0x622   :  { %1511 = vrsqrt.f32 %v952_v49  ;;  %v946_v56 = vmax.f32 %v938_v50, 0.0  ;;  %v924_v57 = vmul.f32 0.03125, %v914_v55  ;;  %v544_v50 = vld [vmem:[%s1939_s7 + $0x10] sm:$0xff] }
 0x623   :  { %v941_v58 = vsub.f32 %v925_v54, %v933_v47  ;;  %1513 = vrsqrt.f32 %v953_v48  ;;  %v955_v59 = vadd.f32 1e-05, %v947_v53  ;;  %v546_v54 = vld [vmem:[%s1939_s7 + $0x20] sm:$0xff] }
 0x624   :  { %v954_v61 = vadd.f32 1e-05, %v946_v56  ;;  %v940_v62 = vsub.f32 %v924_v57, %v932_v52 }
 0x625   :  { %v949_v12 = vmax.f32 %v941_v58, 0.0 }
 0x626   :  { %1515 = vrsqrt.f32 %v954_v61  ;;  %v948_v14 = vmax.f32 %v940_v62, 0.0 }
 0x627   :  { %v1508_v16 = vpop.eup %1507  ;;  %1517 = vrsqrt.f32 %v955_v59  ;;  %v957_v19 = vadd.f32 1e-05, %v949_v12 }
 0x628   :  { %v1510_v17 = vpop.eup %1509  ;;  %v967_v18 = vmul.f32 %v1508_v16, %v535_v63  ;;  %v956_v20 = vadd.f32 1e-05, %v948_v14 }
 0x629   :  { %v966_v21 = vmul.f32 %v1510_v17, %v534_v15 }
 0x62a   :  { %1519 = vrsqrt.f32 %v956_v20  ;;  %997 = vperm.xlu0 %1498, %v967_v18   ;;  %v975_v46 = vmul.f32 %v1785_v0, %v967_v18 }
 0x62b   :  { %992 = vperm.xlu1 %1497, %v966_v21   ;;  %1521 = vrsqrt.f32 %v957_v19  ;;  %v974_v42 = vmul.f32 %v966_v21, %v1787_v1  ;;  %v543_v1 = vld [vmem:[%s1939_s7 + $0x8] sm:$0xff] }
 0x62c   :  { %v1512_v23 = vpop.eup %1511  ;;  %v983_v51 = vsub.f32 %v543_v1, %v975_v46 }
 0x62d   :  { %v968_v7 = vmul.f32 %v1512_v23, %v536_v22  ;;  %v1514_v30 = vpop.eup %1513  ;;  %v982_v48 = vsub.f32 %v542_v45, %v974_v42 }
 0x62e   :  { %v969_v34 = vmul.f32 %v1514_v30, %v537_v32 }
 0x62f   :  { %1002 = vperm.xlu1 %1497, %v968_v7   ;;  %v976_v49 = vmul.f32 %v968_v7, %v1791_v4  ;;  %v545_v4 = vld [vmem:[%s1939_s7 + $0x18] sm:$0xff] }
 0x630   :  { %v1516_v8 = vpop.eup %1515  ;;  %v977_v52 = vmul.f32 %v1789_v2, %v969_v34  ;;  %v547_v2 = vld [vmem:[%s1939_s7 + $0x28] sm:$0xff] }
 0x631   :  { %v970_v35 = vmul.f32 %v1516_v8, %v538_v33  ;;  %v1518_v36 = vpop.eup %1517  ;;  %v984_v53 = vsub.f32 %v544_v50, %v976_v49 }
 0x632   :  { %v971_v40 = vmul.f32 %v1518_v36, %v539_v37  ;;  %v985_v55 = vsub.f32 %v545_v4, %v977_v52 }
 0x633   :  { %1007 = vperm.xlu1 %1497, %v969_v34   ;;  %1012 = vperm.xlu0 %1498, %v970_v35   ;;  %v978_v0 = vmul.f32 %v970_v35, %v1795_v9  ;;  %v548_v9 = vld [vmem:[%s1939_s7 + $0x30] sm:$0xff] }
 0x634   :  { %v1520_v39 = vpop.eup %1519  ;;  %v979_v56 = vmul.f32 %v1793_v6, %v971_v40  ;;  %v549_v6 = vld [vmem:[%s1939_s7 + $0x38] sm:$0xff]  ;;  %s1549_s7 = smov [#allocation2]  }
 0x635   :  { %v972_v41 = vmul.f32 %v1520_v39, %v540_v38  ;;  %v1522_v43 = vpop.eup %1521  ;;  %v986_v57 = vsub.f32 %v546_v54, %v978_v0  ;;  %s1328_s24 = sshll.u32 %s1549_s7, 4  ;;  %s1329_s24 = int_to_ptr.vmem [resolvable:$true] %s1328_s24 }
 0x636   :  { %v973_v47 = vmul.f32 %v1522_v43, %v541_v44  ;;  %v987_v59 = vsub.f32 %v547_v2, %v979_v56  ;;  %s1523_s25 = scalar_lea.vmem %s1329_s24, 32  ;;  %p1528_p1 = scmp.lt.s32.totalorder %s1329_s24, %s1329_s24 }
 0x637   :  { %1017 = vperm.xlu1 %1497, %v971_v40   ;;  %1022 = vperm.xlu0 %1498, %v972_v41   ;;  %v980_v58 = vmul.f32 %v972_v41, %v1799_v11  ;;  %p1524_p0 = scmp.ne.s32.totalorder %s1329_s24, %s1523_s25  ;;  %p1529_p2 = scmp.lt.s32.totalorder %s1523_s25, %s1523_s25 }
 0x638   :  { %v981_v61 = vmul.f32 %v1797_v10, %v973_v47 }
 0x639   :  { %v988_v62 = vsub.f32 %v548_v9, %v980_v58  ;;  %p1530_p3 = por %p1529_p2, %p1528_p1 }
 0x63a   :  { %v989_v11 = vsub.f32 %v549_v6, %v981_v61 }
 0x63b   :  { %1027 = vperm.xlu1 %1497, %v973_v47   ;;  %1040 = vperm.xlu0 %1498, %v982_v48   ;;  %p1531_p4 = pnand %p1530_p3, %p1524_p0 }
 0x63f   :  { %1045 = vperm.xlu1 %1497, %v983_v51   ;;  %1050 = vperm.xlu0 %1498, %v984_v53  }
 0x643   :  { %1055 = vperm.xlu1 %1497, %v985_v55   ;;  %1060 = vperm.xlu0 %1498, %v986_v57  }
 0x647   :  { %1065 = vperm.xlu1 %1497, %v987_v59   ;;  %1070 = vperm.xlu0 %1498, %v988_v62  }
 0x64b   :  { %1075 = vperm.xlu1 %1497, %v989_v11  }
 0x6a9   :  { %v998_v14 = vpop.permute.xlu0 %997 }
 0x6aa   :  { %v993_v63 = vpop.permute.xlu1 %992  ;;  %v1031_v10 = vmul.f32 %v998_v14, %v1708_v3 }
 0x6ab   :  { %v1030_v12 = vmul.f32 %v993_v63, %v1699_v13 }
 0x6ad   :  { %1364 = vmatmul.mubr.msk.f32.vlgmr.msra.gmra.mrb[12].mxu1 %vm651_vm1, %v1030_v12 }
 0x6ae   :  { %v1003_v15 = vpop.permute.xlu1 %1002  ;;  %1172 = vmatprep.mubr.f32.mxu1 %v1548_v60 }
 0x6af   :  { %v1032_v16 = vmul.f32 %v1003_v15, %v1715_v24 }
 0x6b1   :  { %1365 = vmatmul.mubr.msk.f32.gmra.mrb[14].mxu1 %vm651_vm1, %v1031_v10 }
 0x6b2   :  { %1178 = vmatprep.mubr.f32.mxu1 %v1548_v60  ;;  %v1008_v17 = vpop.permute.xlu1 %1007  ;;  %v1013_v18 = vpop.permute.xlu0 %1012 }
 0x6b3   :  { %v1033_v13 = vmul.f32 %v1008_v17, %v1722_v25  ;;  %v1034_v3 = vmul.f32 %v1013_v18, %v1727_v26 }
 0x6b5   :  { %1366 = vmatmul.mubr.msk.f32.gmra.mrb[16].mxu1 %vm651_vm1, %v1032_v16 }
 0x6b6   :  { %1184 = vmatprep.mubr.f32.mxu1 %v1548_v60  ;;  %v1018_v19 = vpop.permute.xlu1 %1017  ;;  %v1023_v20 = vpop.permute.xlu0 %1022 }
 0x6b7   :  { %v1035_v24 = vmul.f32 %v1018_v19, %v1736_v27  ;;  %v1036_v25 = vmul.f32 %v1023_v20, %v1741_v5 }
 0x6b9   :  { %1367 = vmatmul.mubr.msk.f32.gmra.mrb[18].mxu1 %vm651_vm1, %v1033_v13 }
 0x6ba   :  { %1190 = vmatprep.mubr.f32.mxu1 %v1548_v60  ;;  %v1028_v21 = vpop.permute.xlu1 %1027  ;;  %v1041_v22 = vpop.permute.xlu0 %1040 }
 0x6bb   :  { %v1037_v26 = vmul.f32 %v1028_v21, %v1750_v28 }
 0x6bd   :  { %1368 = vmatmul.mubr.msk.f32.gmra.mrb[20].mxu1 %vm651_vm1, %v1034_v3 }
 0x6be   :  { %1196 = vmatprep.mubr.f32.mxu1 %v1548_v60  ;;  %v1046_v33 = vpop.permute.xlu1 %1045  ;;  %v1051_v38 = vpop.permute.xlu0 %1050 }
 0x6c1   :  { %1369 = vmatmul.mubr.msk.f32.gmra.mrb[22].mxu1 %vm651_vm1, %v1035_v24 }
 0x6c2   :  { %1202 = vmatprep.mubr.f32.mxu1 %v1548_v60  ;;  %v1056_v46 = vpop.permute.xlu1 %1055  ;;  %v1061_v0 = vpop.permute.xlu0 %1060 }
 0x6c5   :  { %1370 = vmatmul.mubr.msk.f32.gmra.mrb[24].mxu1 %vm651_vm1, %v1036_v25 }
 0x6c6   :  { %1208 = vmatprep.mubr.f32.mxu1 %v1548_v60  ;;  %v1066_v59 = vpop.permute.xlu1 %1065  ;;  %v1071_v10 = vpop.permute.xlu0 %1070 }
 0x6c9   :  { %1371 = vmatmul.mubr.msk.f32.gmra.mrb[26].mxu1 %vm651_vm1, %v1037_v26 }
 0x6ca   :  { %v1076_v25 = vpop.permute.xlu1 %1075 }
 0x780   :  { %v1168_v23 = vpop.f32.mrb[12].mxu1 }
 0x781   :  { %v1169_v7 = vadd.f32 %v1168_v23, %v1041_v22  ;;  %v1170_v27 = vpop.f32.mrb[13].mxu1 }
 0x782   :  { %v1171_v30 = vadd.f32 %v1170_v27, %v1041_v22 }
 0x783   :  { %v1215_v32 = vmul.f32 %v1169_v7, %v1684_v29 }
 0x784   :  { %v1174_v8 = vpop.f32.mrb[14].mxu1  ;;  %v1216_v5 = vmul.f32 %v1171_v30, %v1686_v31 }
 0x785   :  { %v1175_v34 = vadd.f32 %v1174_v8, %v1046_v33  ;;  %v1176_v35 = vpop.f32.mrb[15].mxu1  ;;  %v1231_v36 = vmax.f32 %v1215_v32, 0.0 }
 0x786   :  { %v1177_v37 = vadd.f32 %v1176_v35, %v1046_v33  ;;  %v1232_v60 = vmax.f32 %v1216_v5, 0.0 }
 0x787   :  { %1247 = vmax.xlane.f32.xlu0 %v1231_v36  ;;  %v1217_v28 = vmul.f32 %v1175_v34, %v1684_v29 }
 0x788   :  { %1263 = vmax.xlane.f32.xlu1 %v1232_v60  ;;  %v1180_v39 = vpop.f32.mrb[16].mxu1  ;;  %v1218_v43 = vmul.f32 %v1177_v37, %v1686_v31 }
 0x789   :  { %v1181_v40 = vadd.f32 %v1180_v39, %v1051_v38  ;;  %v1182_v41 = vpop.f32.mrb[17].mxu1  ;;  %v1233_v42 = vmax.f32 %v1217_v28, 0.0 }
 0x78a   :  { %v1183_v44 = vadd.f32 %v1182_v41, %v1051_v38  ;;  %v1234_v50 = vmax.f32 %v1218_v43, 0.0 }
 0x78b   :  { %1249 = vmax.xlane.f32.xlu0 %v1233_v42  ;;  %v1219_v45 = vmul.f32 %v1181_v40, %v1684_v29 }
 0x78c   :  { %v1186_v47 = vpop.f32.mrb[18].mxu1  ;;  %v1220_v51 = vmul.f32 %v1183_v44, %v1686_v31 }
 0x78d   :  { %v1187_v48 = vadd.f32 %v1186_v47, %v1056_v46  ;;  %v1188_v49 = vpop.f32.mrb[19].mxu1  ;;  %v1235_v1 = vmax.f32 %v1219_v45, 0.0 }
 0x78e   :  { %v1189_v52 = vadd.f32 %v1188_v49, %v1056_v46  ;;  %v1236_v56 = vmax.f32 %v1220_v51, 0.0 }
 0x78f   :  { %1251 = vmax.xlane.f32.xlu1 %v1235_v1  ;;  %1265 = vmax.xlane.f32.xlu0 %v1234_v50  ;;  %v1221_v53 = vmul.f32 %v1187_v48, %v1684_v29 }
 0x790   :  { %v1192_v4 = vpop.f32.mrb[20].mxu1  ;;  %v1222_v58 = vmul.f32 %v1189_v52, %v1686_v31 }
 0x791   :  { %v1193_v54 = vadd.f32 %v1192_v4, %v1061_v0  ;;  %v1194_v55 = vpop.f32.mrb[21].mxu1  ;;  %v1237_v57 = vmax.f32 %v1221_v53, 0.0 }
 0x792   :  { %v1195_v2 = vadd.f32 %v1194_v55, %v1061_v0  ;;  %v1238_v11 = vmax.f32 %v1222_v58, 0.0 }
 0x793   :  { %1267 = vmax.xlane.f32.xlu0 %v1236_v56  ;;  %1253 = vmax.xlane.f32.xlu1 %v1237_v57  ;;  %v1223_v9 = vmul.f32 %v1193_v54, %v1684_v29 }
 0x794   :  { %v1198_v61 = vpop.f32.mrb[22].mxu1  ;;  %v1224_v12 = vmul.f32 %v1195_v2, %v1686_v31 }
 0x795   :  { %v1199_v62 = vadd.f32 %v1198_v61, %v1066_v59  ;;  %v1200_v6 = vpop.f32.mrb[23].mxu1  ;;  %v1239_v63 = vmax.f32 %v1223_v9, 0.0 }
 0x796   :  { %v1201_v14 = vadd.f32 %v1200_v6, %v1066_v59  ;;  %v1240_v18 = vmax.f32 %v1224_v12, 0.0 }
 0x797   :  { %1269 = vmax.xlane.f32.xlu0 %v1238_v11  ;;  %1255 = vmax.xlane.f32.xlu1 %v1239_v63  ;;  %v1225_v15 = vmul.f32 %v1199_v62, %v1684_v29 }
 0x798   :  { %v1204_v16 = vpop.f32.mrb[24].mxu1  ;;  %v1226_v19 = vmul.f32 %v1201_v14, %v1686_v31 }
 0x799   :  { %v1205_v17 = vadd.f32 %v1204_v16, %v1071_v10  ;;  %v1206_v13 = vpop.f32.mrb[25].mxu1  ;;  %v1241_v3 = vmax.f32 %v1225_v15, 0.0 }
 0x79a   :  { %v1207_v24 = vadd.f32 %v1206_v13, %v1071_v10  ;;  %v1242_v23 = vmax.f32 %v1226_v19, 0.0 }
 0x79b   :  { %1271 = vmax.xlane.f32.xlu0 %v1240_v18  ;;  %1257 = vmax.xlane.f32.xlu1 %v1241_v3  ;;  %v1227_v20 = vmul.f32 %v1205_v17, %v1684_v29 }
 0x79c   :  { %v1210_v21 = vpop.f32.mrb[26].mxu1  ;;  %v1228_v27 = vmul.f32 %v1207_v24, %v1686_v31 }
 0x79d   :  { %v1211_v26 = vadd.f32 %v1210_v21, %v1076_v25  ;;  %v1212_v22 = vpop.f32.mrb[27].mxu1  ;;  %v1243_v7 = vmax.f32 %v1227_v20, 0.0 }
 0x79e   :  { %v1213_v30 = vadd.f32 %v1212_v22, %v1076_v25  ;;  %v1244_v33 = vmax.f32 %v1228_v27, 0.0 }
 0x79f   :  { %1273 = vmax.xlane.f32.xlu0 %v1242_v23  ;;  %1259 = vmax.xlane.f32.xlu1 %v1243_v7  ;;  %v1229_v32 = vmul.f32 %v1211_v26, %v1684_v29 }
 0x7a0   :  { %v1230_v5 = vmul.f32 %v1213_v30, %v1686_v31 }
 0x7a1   :  { %v1245_v8 = vmax.f32 %v1229_v32, 0.0 }
 0x7a2   :  { %v1246_v34 = vmax.f32 %v1230_v5, 0.0 }
 0x7a3   :  { %1275 = vmax.xlane.f32.xlu0 %v1244_v33  ;;  %1261 = vmax.xlane.f32.xlu1 %v1245_v8 }
 0x7a7   :  { %1277 = vmax.xlane.f32.xlu0 %v1246_v34 }
 0x814   :  { %v1248_v35 = vpop.xlane.xlu0 %1247 }
 0x815   :  { %v1264_v36 = vpop.xlane.xlu1 %1263 }
 0x816   :  { %v1280_v37 = vsel %vm1279_vm2, %v1248_v35, %v1264_v36 }
 0x817   :  { %1288 = vxpose.xlu1.b32.start [1/8] (short) (narrow) %v1280_v37, 8 }
 0x818   :  { %v1250_v60 = vpop.xlane.xlu0 %1249 }
 0x81c   :  { %v1266_v28 = vpop.xlane.xlu0 %1265  ;;  %v1252_v38 = vpop.xlane.xlu1 %1251 }
 0x81d   :  { %v1281_v39 = vsel %vm1279_vm2, %v1250_v60, %v1266_v28 }
 0x81e   :  { %1289 = vxpose.xlu1.b32.cont [2/8] (short) (narrow) %v1281_v39, 8 }
 0x820   :  { %v1268_v29 = vpop.xlane.xlu0 %1267  ;;  %v1254_v40 = vpop.xlane.xlu1 %1253 }
 0x821   :  { %v1282_v31 = vsel %vm1279_vm2, %v1252_v38, %v1268_v29 }
 0x822   :  { %1290 = vxpose.xlu1.b32.cont [3/8] (short) (narrow) %v1282_v31, 8 }
 0x824   :  { %v1270_v41 = vpop.xlane.xlu0 %1269  ;;  %v1256_v42 = vpop.xlane.xlu1 %1255 }
 0x825   :  { %v1283_v43 = vsel %vm1279_vm2, %v1254_v40, %v1270_v41 }
 0x826   :  { %1291 = vxpose.xlu1.b32.cont [4/8] (short) (narrow) %v1283_v43, 8 }
 0x828   :  { %v1272_v44 = vpop.xlane.xlu0 %1271  ;;  %v1258_v45 = vpop.xlane.xlu1 %1257 }
 0x829   :  { %v1284_v46 = vsel %vm1279_vm2, %v1256_v42, %v1272_v44 }
 0x82a   :  { %1292 = vxpose.xlu1.b32.cont [5/8] (short) (narrow) %v1284_v46, 8 }
 0x82c   :  { %v1274_v47 = vpop.xlane.xlu0 %1273  ;;  %v1260_v49 = vpop.xlane.xlu1 %1259 }
 0x82d   :  { %v1285_v48 = vsel %vm1279_vm2, %v1258_v45, %v1274_v47 }
 0x82e   :  { %1293 = vxpose.xlu1.b32.cont [6/8] (short) (narrow) %v1285_v48, 8 }
 0x830   :  { %v1276_v1 = vpop.xlane.xlu0 %1275  ;;  %v1262_v51 = vpop.xlane.xlu1 %1261 }
 0x831   :  { %v1286_v50 = vsel %vm1279_vm2, %v1260_v49, %v1276_v1 }
 0x832   :  { %1294 = vxpose.xlu1.b32.cont [7/8] (short) (narrow) %v1286_v50, 8 }
 0x834   :  { %v1278_v52 = vpop.xlane.xlu0 %1277 }
 0x835   :  { %v1287_v53 = vsel %vm1279_vm2, %v1262_v51, %v1278_v52 }
 0x836   :  { %1295 = vxpose.xlu1.b32.end [8/8] (short) (narrow) %v1287_v53, 8 }
 0x89a   :  { %v1304_v0 = vpop.trf.xlu1 }
 0x89b   :  { %1321 = vst.msk [vmem:[#allocation2] sm:$0x3] %vm1320_vm3, %v1304_v0 }
 0x89c   :  { %1534 = shalt.err (!%p1531_p4)
}
 0x89d   :  { %s1535_s28 = scalar_lea.hbm %s1940_s8, 32 }
 0x89e   :  { %p1536_p5 = scmp.ne.s32.totalorder %s1940_s8, %s1535_s28  ;;  %p1539_p6 = scmp.lt.u32.totalorder %s1535_s28, %s1940_s8 }
 0x8a0   :  { %p1541_p7 = pnand %p1539_p6, %p1536_p5 }
 0x8a2   :  { %1544 = shalt.err (!%p1541_p7)
}
 0x8a3   :  { %1331 = dma.vmem_to_hbm [thread:$0]  %s1329_s24, 32, %s1940_s8, [#allocation3]  }
 0x8a4   :  { %1545 = dma.done.wait [#allocation3], 32  }
 0x8a5   :  { %1546 = vsyncadd [#allocation3], 4294967264 }
 0x8a6   :  { %1335 = vsyncpa [#allocation3], 1 }

</bundles_post_ra>
